<compile_context>
chip_gen: v7x
topology: tpu7x:2x2x1
jax: 0.10.0
libtpu: 0.0.40
codegen_flags: <defaults>
</compile_context>

<pallas_src>
import jax
import jax.numpy as jnp
from jax.experimental import pallas as pl
from jax.experimental.pallas import tpu as pltpu

BN_EPS = 1e-5


def _round_up(a, b):
    return ((a + b - 1) // b) * b


def _cdiv(a, b):
    return (a + b - 1) // b


def _conv_glu(xi_ref, w_ref):
    """Fused (conv1|conv2, all K taps, G packed positions, bias lane) matmul + GLU gate.

    xi_ref: (TRg, G*F)        packed im2col rows (G positions per row, bias lane folded)
    w_ref : (G*F, 2*G*C_out_p)  block-diagonal fused weight (bias row folded)
    returns glu: (TRg, G*C_out_p) in f32
    """
    acc = jnp.dot(xi_ref[...], w_ref[...], preferred_element_type=jnp.float32)
    half = acc.shape[-1] // 2            # lane slice at a multiple-of-128 boundary (cheap)
    return acc[:, :half] * jax.nn.sigmoid(acc[:, half:])


def _stats_kernel(xi_ref, w_ref, part_ref):
    """Pass 1: per-tile sum / sum-of-squares of the GLU output.

    Padded rows (and padded output channels) have a zero bias lane / zero weight column,
    so they produce glu == 0 and need no masking.
    """
    glu = _conv_glu(xi_ref, w_ref)                               # (TRg, Cg) f32
    part_ref[0, 0:1, :] = jnp.sum(glu, axis=0, keepdims=True)
    part_ref[0, 1:2, :] = jnp.sum(glu * glu, axis=0, keepdims=True)


def _norm_kernel(xi_ref, w_ref, aff_ref, o_ref):
    """Pass 2: recompute conv+GLU and apply the folded BatchNorm affine (lane-dense store)."""
    glu = _conv_glu(xi_ref, w_ref)
    aff = aff_ref[...]                                           # (2, Cg) f32
    o_ref[...] = glu * aff[0:1, :] + aff[1:2, :]


def temporal_conv_layer(x, w1, b1, w2, b2, gamma, beta, *,
                        tile_rows=2048, im2col_dtype=jnp.bfloat16):
    """x: [B, T, N, C_in]; w*: [K, C_in, C_out]; b*/gamma/beta: [C_out]."""
    B, T, N, C_in = x.shape
    K, _, C_out = w1.shape
    pad = K // 2
    R = B * T * N                                    # one row per (b, t, n) position
    F_raw = K * C_in

    # ---------------- lane layout: G packed positions per matmul row ----------------
    F = _round_up(F_raw + 1, 8)                      # +1 lane reserved for the folded bias
    G = 1
    for g in (8, 4, 2):
        if g * F <= 128:
            G = g
            break
    if 128 // G >= F:
        F = 128 // G                                 # lane-dense LHS: G*F == 128
    C_out_p = _round_up(C_out, 128 // G)             # lane-dense outputs: Cg % 128 == 0
    Cg = G * C_out_p                                 # glu / output lane width
    Cw = 2 * Cg                                      # fused conv output lane width

    # ------- row tiling: big tiles (amortize per-step overhead), >=2 even tiles -------
    Rg = _cdiv(R, G)                                 # grouped rows needed
    max_trg = max(8, (tile_rows // 8) * 8)
    num_tiles = max(2, _cdiv(Rg, max_trg))           # >=2 so v7x's two TCs both get work
    if num_tiles % 2:
        num_tiles += 1                               # balanced across the 2 cores
    TRg = _round_up(_cdiv(Rg, num_tiles), 8)         # grouped rows per grid step
    Rg_pad = num_tiles * TRg
    R_pad = Rg_pad * G

    # ------------- wrapper-side layout plumbing (pure XLA, no transposes) -------------
    xs = x.astype(im2col_dtype)
    xp = jnp.pad(xs, ((0, 0), (pad, pad), (0, 0), (0, 0)))
    xi = jnp.concatenate([xp[:, k:k + T] for k in range(K)], axis=-1)   # [B,T,N,K*C_in]
    xi = xi.reshape(R, F_raw)
    # bias lane = 1 for real rows; row-padding below leaves it 0 -> padded rows give glu==0
    xi = jnp.concatenate(
        [xi,
         jnp.ones((R, 1), im2col_dtype),
         jnp.zeros((R, F - F_raw - 1), im2col_dtype)], axis=-1)          # (R, F)
    xi = jnp.pad(xi, ((0, R_pad - R), (0, 0))).reshape(Rg_pad, G * F)

    # Fused block-diagonal weights: [conv1 | conv2] replicated per packed position,
    # conv bias folded into the reserved contraction lane, C_out padded to C_out_p.
    def fold(w, b):
        wf = jnp.pad(w.reshape(F_raw, C_out).astype(jnp.float32),
                     ((0, 0), (0, C_out_p - C_out)))
        brow = jnp.pad(b.astype(jnp.float32), (0, C_out_p - C_out))[None]
        return jnp.concatenate(
            [wf, brow, jnp.zeros((F - F_raw - 1, C_out_p), jnp.float32)], axis=0)  # (F, C_out_p)

    eye = jnp.eye(G, dtype=jnp.float32)
    w_big = jnp.concatenate([jnp.kron(eye, fold(w1, b1)),
                             jnp.kron(eye, fold(w2, b2))],
                            axis=1).astype(im2col_dtype)                  # (G*F, Cw)

    # vmem budget derived from the actual per-step footprint (double-buffered + headroom)
    elt = jnp.dtype(im2col_dtype).itemsize
    tile_bytes = (TRg * G * F * elt          # xi tile
                  + G * F * Cw * elt         # fused weight
                  + TRg * Cw * 4             # matmul intermediate (f32)
                  + TRg * Cg * 4             # glu / output tile (f32)
                  + 4 * Cg * 4)              # affine / partial stats
    vmem_limit = int(min(48 << 20, max(16 << 20, 2 * tile_bytes + (8 << 20))))
    cparams = pltpu.CompilerParams(
        dimension_semantics=("parallel",),   # shard row tiles across v7x's 2 TensorCores
        vmem_limit_bytes=vmem_limit)

    # ------------- pass 1: global BN statistics (per-tile sum / sumsq) -------------
    partials = pl.pallas_call(
        _stats_kernel,
        out_shape=jax.ShapeDtypeStruct((num_tiles, 2, Cg), jnp.float32),
        grid=(num_tiles,),
        in_specs=[pl.BlockSpec((TRg, G * F), lambda i: (i, 0)),
                  pl.BlockSpec((G * F, Cw), lambda i: (0, 0))],   # weights VMEM-resident
        out_specs=pl.BlockSpec((1, 2, Cg), lambda i: (i, 0, 0)),
        compiler_params=cparams,
    )(xi, w_big)

    # Tiny cross-tile reduction + scale/shift fold in XLA.
    # (One-pass variance in f32 is fine at these magnitudes; for very large R switch to
    #  shifted sums to avoid cancellation.)
    sums = jnp.sum(partials, axis=0)                              # (2, Cg)
    s1 = jnp.sum(sums[0].reshape(G, C_out_p), axis=0)[:C_out]
    s2 = jnp.sum(sums[1].reshape(G, C_out_p), axis=0)[:C_out]
    mean = s1 / R
    var = jnp.maximum(s2 / R - mean * mean, 0.0)                  # biased batch variance
    scale = gamma.astype(jnp.float32) * jax.lax.rsqrt(var + BN_EPS)
    shift = beta.astype(jnp.float32) - mean * scale
    scale_p = jnp.pad(scale, (0, C_out_p - C_out))
    shift_p = jnp.pad(shift, (0, C_out_p - C_out))
    affine = jnp.stack([jnp.tile(scale_p, G), jnp.tile(shift_p, G)])   # (2, Cg) f32

    # ------------- pass 2: recompute conv+GLU, apply folded BN affine -------------
    out_g = pl.pallas_call(
        _norm_kernel,
        out_shape=jax.ShapeDtypeStruct((Rg_pad, Cg), jnp.float32),
        grid=(num_tiles,),
        in_specs=[pl.BlockSpec((TRg, G * F), lambda i: (i, 0)),
                  pl.BlockSpec((G * F, Cw), lambda i: (0, 0)),
                  pl.BlockSpec((2, Cg), lambda i: (0, 0))],
        out_specs=pl.BlockSpec((TRg, Cg), lambda i: (i, 0)),
        compiler_params=cparams,
    )(xi, w_big, affine)

    # Back to [B, T, N, C_out]: rows were never permuted, so this is free layout plumbing.
    out = out_g.reshape(Rg_pad, G, C_out_p)[..., :C_out].reshape(R_pad, C_out)
    return out[:R].reshape(B, T, N, C_out)


def temporal_conv_layer_ref(x, w1, b1, w2, b2, gamma, beta):
    """Pure-JAX reference (same semantics as the PyTorch module in training mode)."""
    B, T, N, C_in = x.shape
    K, _, C_out = w1.shape
    pad = K // 2
    xp = jnp.pad(x, ((0, 0), (pad, pad), (0, 0), (0, 0)))

    def conv(w, b):
        acc = jnp.zeros((B, T, N, C_out), jnp.float32)
        for k in range(K):
            acc = acc + jnp.einsum('btnc,co->btno', xp[:, k:k + T], w[k])
        return acc + b

    c1 = conv(w1, b1)
    c2 = conv(w2, b2)
    glu = c1 * jax.nn.sigmoid(c2)
    mean = glu.mean(axis=(0, 1, 2), keepdims=True)
    var = ((glu - mean) ** 2).mean(axis=(0, 1, 2), keepdims=True)
    return (glu - mean) * jax.lax.rsqrt(var + BN_EPS) * gamma + beta


if __name__ == "__main__":
    # Small shapes: batch=2, time_steps=8, num_nodes=16, in_channels=4,
    # out_channels=32, kernel_size=3.
    B, T, N = 2, 8, 16
    C_in, C_out, K = 4, 32, 3

    key = jax.random.PRNGKey(0)
    kx, k1, k2, kb1, kb2 = jax.random.split(key, 5)

    x = jax.random.normal(kx, (B, T, N, C_in), dtype=jnp.float32)

    # Deterministic synthetic params. PyTorch Conv2d weights are [C_out, C_in, 1, K];
    # we store them as [K, C_in, C_out].
    bound = 1.0 / (C_in * K) ** 0.5
    w1_t = jax.random.uniform(k1, (C_out, C_in, 1, K), minval=-bound, maxval=bound)
    w2_t = jax.random.uniform(k2, (C_out, C_in, 1, K), minval=-bound, maxval=bound)
    b1 = jax.random.uniform(kb1, (C_out,), minval=-bound, maxval=bound)
    b2 = jax.random.uniform(kb2, (C_out,), minval=-bound, maxval=bound)
    w1 = jnp.transpose(w1_t[:, :, 0, :], (2, 1, 0))   # [K, C_in, C_out]
    w2 = jnp.transpose(w2_t[:, :, 0, :], (2, 1, 0))

    gamma = jnp.ones((C_out,), jnp.float32)   # BatchNorm default init
    beta = jnp.zeros((C_out,), jnp.float32)

    ref = temporal_conv_layer_ref(x, w1, b1, w2, b2, gamma, beta)

    # Exact-precision path (f32 im2col + f32 MXU operands): strict tolerance.
    # The >=2-tile rule gives a 2-step "parallel" grid even at this tiny size,
    # exercising the tiled two-pass BatchNorm path with the default tile_rows.
    out_f32 = jax.block_until_ready(
        temporal_conv_layer(x, w1, b1, w2, b2, gamma, beta, im2col_dtype=jnp.float32))
    assert out_f32.shape == (B, T, N, C_out)
    assert jnp.all(jnp.isfinite(out_f32))
    assert jnp.allclose(out_f32, ref, atol=1e-4, rtol=1e-4)

    # Perf path (default): bf16 im2col/weights halve HBM traffic and force single-pass
    # bf16 MXU (keeps v5e HBM-bound); GLU/BN math stays f32 -> looser tolerance.
    out_bf16 = jax.block_until_ready(
        temporal_conv_layer(x, w1, b1, w2, b2, gamma, beta))
    assert out_bf16.shape == (B, T, N, C_out)
    assert jnp.all(jnp.isfinite(out_bf16))
    assert jnp.allclose(out_bf16, ref, atol=5e-2, rtol=5e-2)

    print("KERNEL_OK")
</pallas_src>

<mosaic_0001>
module attributes {stable_mosaic.version = 11 : i64} {
  func.func @_stats_kernel(%arg0: i32, %arg1: memref<16x128xf32, #tpu.memory_space<vmem>>, %arg2: memref<128x512xf32, #tpu.memory_space<vmem>>, %arg3: memref<1x2x256xf32, #tpu.memory_space<vmem>>) attributes {dimension_semantics = [#tpu.dimension_semantics<parallel>], iteration_bounds = array<i64: 2>, scalar_prefetch = 0 : i64, scratch_operands = 0 : i64, tpu.core_type = #tpu.core_type<tc>, window_params = [{transform_indices = @transform_0, window_bounds = array<i64: 16, 128>}, {pipeline_mode = #tpu.pipeline_mode<synchronous>, transform_indices = @transform_1, window_bounds = array<i64: 128, 512>}, {transform_indices = @transform_2, window_bounds = array<i64: 1, 2, 256>}]} {
    %c0 = arith.constant 0 : index
    %c0_0 = arith.constant 0 : index
    %0 = vector.load %arg1[%c0, %c0_0] : memref<16x128xf32, #tpu.memory_space<vmem>>, vector<16x128xf32>
    %c0_1 = arith.constant 0 : index
    %c0_2 = arith.constant 0 : index
    %1 = vector.load %arg2[%c0_1, %c0_2] : memref<128x512xf32, #tpu.memory_space<vmem>>, vector<128x512xf32>
    %cst = arith.constant dense<0.000000e+00> : vector<16x512xf32>
    %2 = tpu.matmul %0, %1, %cst {dimension_numbers = #tpu.dot_dimension_numbers<[1], [0], [0], [1], [0, 0, 1, 1], [], []>} : vector<16x128xf32>, vector<128x512xf32>, vector<16x512xf32> -> vector<16x512xf32>
    %3 = vector.extract_strided_slice %2 {offsets = [0, 0], sizes = [16, 256], strides = [1, 1]} : vector<16x512xf32> to vector<16x256xf32>
    %4 = vector.extract_strided_slice %2 {offsets = [0, 256], sizes = [16, 256], strides = [1, 1]} : vector<16x512xf32> to vector<16x256xf32>
    %5 = arith.negf %4 : vector<16x256xf32>
    %6 = math.exp %5 : vector<16x256xf32>
    %cst_3 = arith.constant 1.000000e+00 : f32
    %7 = vector.broadcast %cst_3 : f32 to vector<16x256xf32>
    %8 = arith.addf %7, %6 : vector<16x256xf32>
    %9 = arith.divf %7, %8 : vector<16x256xf32>
    %10 = arith.mulf %3, %9 : vector<16x256xf32>
    %cst_4 = arith.constant dense<0.000000e+00> : vector<256xf32>
    %11 = vector.multi_reduction <add>, %10, %cst_4 [0] : vector<16x256xf32> to vector<256xf32>
    %12 = vector.shape_cast %11 : vector<256xf32> to vector<1x256xf32>
    %c0_5 = arith.constant 0 : index
    %c0_6 = arith.constant 0 : index
    %c0_7 = arith.constant 0 : index
    %13 = vector.load %arg3[%c0_5, %c0_6, %c0_7] : memref<1x2x256xf32, #tpu.memory_space<vmem>>, vector<1x1x256xf32>
    %14 = vector.shape_cast %13 : vector<1x1x256xf32> to vector<1x256xf32>
    %15 = vector.shape_cast %12 : vector<1x256xf32> to vector<1x1x256xf32>
    tpu.vector_store %arg3[%c0_5, %c0_6, %c0_7], %15 {strides = array<i32>} : memref<1x2x256xf32, #tpu.memory_space<vmem>>, vector<1x1x256xf32>,
    %16 = arith.mulf %10, %10 : vector<16x256xf32>
    %cst_8 = arith.constant dense<0.000000e+00> : vector<256xf32>
    %17 = vector.multi_reduction <add>, %16, %cst_8 [0] : vector<16x256xf32> to vector<256xf32>
    %18 = vector.shape_cast %17 : vector<256xf32> to vector<1x256xf32>
    %c0_9 = arith.constant 0 : index
    %c1 = arith.constant 1 : index
    %c0_10 = arith.constant 0 : index
    %19 = vector.load %arg3[%c0_9, %c1, %c0_10] : memref<1x2x256xf32, #tpu.memory_space<vmem>>, vector<1x1x256xf32>
    %20 = vector.shape_cast %19 : vector<1x1x256xf32> to vector<1x256xf32>
    %21 = vector.shape_cast %18 : vector<1x256xf32> to vector<1x1x256xf32>
    tpu.vector_store %arg3[%c0_9, %c1, %c0_10], %21 {strides = array<i32>} : memref<1x2x256xf32, #tpu.memory_space<vmem>>, vector<1x1x256xf32>,
    return
  }
  func.func @transform_0(%arg0: i32) -> (i32, i32) {
    %c0_i32 = arith.constant 0 : i32
    %c0_i32_0 = arith.constant 0 : i32
    return %arg0, %c0_i32 : i32, i32
  }
  func.func @transform_1(%arg0: i32) -> (i32, i32) {
    %c0_i32 = arith.constant 0 : i32
    %c0_i32_0 = arith.constant 0 : i32
    %c0_i32_1 = arith.constant 0 : i32
    return %c0_i32, %c0_i32_0 : i32, i32
  }
  func.func @transform_2(%arg0: i32) -> (i32, i32, i32) {
    %c0_i32 = arith.constant 0 : i32
    %c0_i32_0 = arith.constant 0 : i32
    %c0_i32_1 = arith.constant 0 : i32
    return %arg0, %c0_i32, %c0_i32_0 : i32, i32, i32
  }
}

</mosaic_0001>

<bundles_post_ra>
// kernel: tpu_custom_call.1
= control target key start
LH: loop header
LB: loop body
LE: loop exit
PB: predicated region body
PF: predicated region fallthrough
CT: control target
= control target key end

     0   :  { %7 = vsyncpa [#allocation3], 0  ;;  %s1124_s0 = inlined_call_operand.hbm [shape: f32[32,128], index: 0, kind: input, shape index: {}]   ;;  %s1125_s1 = inlined_call_operand.hbm [shape: f32[128,512], index: 1, kind: input, shape index: {}]   ;;  %s1126_s2 = inlined_call_operand.hbm [shape: f32[2,2,256], index: 2, kind: output, shape index: {}]  }
   0x1   :  { %9 = vsyncpa [#allocation3 + $0x1], 0 }
   0x2   :  { %10 = vsyncpa [#allocation6], 0 }
   0x3   :  { %11 = vsyncpa [#allocation4], 0 }
   0x4   :  { %13 = vsyncpa [#allocation4 + $0x1], 0  ;;  %s916_s9 = smov 0   ;;  %s918_s10 = smov 0  }
   0x5   :  { %s920_s11 = smov 0   ;;  %s922_s12 = smov 0  }
   0x6 LB: > { %s937_s13 = sadd.s32 4294967295, %s890_s12   ;;  %s596_s14 = sadd.s32 4294967294, %s890_s12   ;;  %s890_s12 = sphi %s922_s12, %s1146_s12   ;;  %s886_s11 = sphi %s920_s11, %s1145_s11   ;;  %s882_s10 = sphi %s918_s10, %s1144_s10   ;;  %s878_s9 = sphi %s916_s9, %s1143_s9  }
   0x7   : > { %p39_p0 = scmp.ne.s32.totalorder %s882_s10, %s878_s9  ;;  %p1127_p1 = scmp.eq.s32.totalorder %s937_s13, 0 }
   0x8   : > { %p90_p3 = scmp.eq.s32.totalorder %s596_s14, 1  ;;  %p597_p5 = scmp.ge.s32.totalorder %s890_s12, 1 }
   0x9   : > { %p946_p4 = por %p1127_p1, %p39_p0  ;;  %p97_p7 = scmp.lt.s32.totalorder %s890_s12, 3 }
   0xa   : > { %p951_p6 = por %p90_p3, %p39_p0  ;;  %s892_s18 = smov [#allocation5]  }
   0xb   : > { %s1130_s15 = scalar_select %p946_p4, 1, 0 }
   0xc   : > { %s1131_s16 = scalar_select %p951_p6, 1, 0 }
   0xd   : > { %p956_p8 = pnand %p597_p5, %p97_p7  ;;  %s109_s19 = sshll.u32 %s892_s18, 4  ;;  %s960_s19 = int_to_ptr.vmem [resolvable:$true] %s109_s19 }
   0xe   : > { %s972_s21 = sadd.s32 1, %s890_s12   ;;  %s26_s22 = sadd.s32 1, %s886_s11 }
   0xf   : > { %s1132_s17 = scalar_select %p956_p8, 1, 0 }
  0x10   : > { %p691_p9 = pneg %p956_p8  ;;  %s23_s23 = ssub.s32 %s890_s12, %s972_s21 }
  0x11   : > { %s762_s26 = scalar_lea.hbm %s1125_s1, 8192 }
  0x12   : > { %p967_p11 = pnand %p691_p9, %p1127_p1  ;;  %p763_p12 = scmp.ne.s32.totalorder %s1125_s1, %s762_s26 }
  0x13   : > { %p769_p5 = scmp.lt.u32.totalorder %s762_s26, %s1125_s1 }
  0x14   : > { %p764_p13 = pneg %p967_p11 }
  0x16   : > { %p765_p0 = pnand %p764_p13, %p763_p12 }
  0x18   : > { %p766_p3 = pneg %p765_p0 }
  0x1a   : > { %p771_p7 = pnand %p769_p5, %p766_p3 }
  0x1c   : > { %774 = shalt.err (!%p771_p7)
}
  0x1d   : > { %s775_s3 = scalar_lea.vmem %s960_s19, 8192  ;;  %p783_p2 = scmp.lt.s32.totalorder %s960_s19, %s960_s19 }
  0x1e   : > { %p776_p9 = scmp.ne.s32.totalorder %s960_s19, %s775_s3  ;;  %p784_p6 = scmp.lt.s32.totalorder %s775_s3, %s775_s3 }
  0x20   : > { %p778_p10 = pnand %p776_p9, %p764_p13  ;;  %p785_p4 = por %p784_p6, %p783_p2 }
  0x22   : > { %p779_p1 = pneg %p778_p10 }
  0x24   : > { %p786_p8 = pnand %p785_p4, %p779_p1 }
  0x26   : > { %789 = shalt.err (!%p786_p8)
}
  0x27   : > { %s893_s4 = smov 512   ;;  %s894_s5 = smov 32  }
  0x28   : > { %694 = dma.hbm_to_vmem [thread:$0]  (!%p967_p11), %s1125_s1, 8192, %s960_s19, [#allocation6], %s893_s4, %s893_s4, %s894_s5  }
  0x29   : > { %p24_p2 = scmp.eq.s32.totalorder %s23_s23, 0  ;;  %p33_p1 = scmp.ne.s32.totalorder %s886_s11, %s882_s10 }
  0x2a   : > { %p34_p4 = scmp.eq.s32.totalorder %s890_s12, 0  ;;  %p704_p6 = scmp.lt.s32.totalorder %s890_s12, 2 }
  0x2b   : > { %s1003_s8 = scalar_select %p24_p2, %s886_s11, %s26_s22  }
  0x2c   : > { %p35_p8 = por %p34_p4, %p33_p1  ;;  %p1134_p10 = scmp.eq.s32.totalorder %s937_s13, 1 }
  0x2d   : > { %s123_s18 = sand.u32 1, %s886_s11   ;;  %s617_s24 = sshll.u32 %s890_s12, 8 }
  0x2e   : > { %p1007_p12 = por %p1134_p10, %p33_p1  ;;  %s600_s25 = sshll.u32 %s123_s18, 4 }
  0x2f   : > { %s1016_s27 = scalar_lea.hbm %s1124_s0, %s617_s24  ;;  %s127_s19 = scalar_lea.vmem [#allocation2], %s600_s25 }
  0x30   : > { %s134_s22 = sshll.u32 %s127_s19, 4  ;;  %p1018_p11 = pnand %p704_p6, %p35_p8  ;;  %s1022_s22 = int_to_ptr.vmem [resolvable:$true] %s134_s22 }
  0x31   : > { %s1024_s28 = scalar_lea.sflag [#allocation3], %s123_s18  ;;  %s790_s29 = scalar_lea.hbm %s1016_s27, 256 }
  0x32   : > { %p791_p13 = scmp.ne.s32.totalorder %s1016_s27, %s790_s29  ;;  %p792_p0 = pneg %p1018_p11 }
  0x33   : > { %s795_s4 = scalar_lea.hbm %s1124_s0, 512  ;;  %p796_p7 = scmp.lt.u32.totalorder %s1016_s27, %s1124_s0 }
  0x34   : > { %p793_p3 = pnand %p792_p0, %p791_p13  ;;  %p797_p9 = scmp.lt.u32.totalorder %s795_s4, %s790_s29 }
  0x35   : > { %p799_p1 = scmp.lt.u32.totalorder %s790_s29, %s1016_s27 }
  0x36   : > { %p794_p5 = pneg %p793_p3  ;;  %p798_p2 = por %p797_p9, %p796_p7 }
  0x38   : > { %p800_p4 = por %p799_p1, %p798_p2 }
  0x3a   : > { %p801_p6 = pnand %p800_p4, %p794_p5 }
  0x3c   : > { %804 = shalt.err (!%p801_p6)
}
  0x3d   : > { %s805_s7 = scalar_lea.vmem %s1022_s22, 256  ;;  %s895_s18 = smov [#allocation2]  }
  0x3e   : > { %p806_p8 = scmp.ne.s32.totalorder %s1022_s22, %s805_s7  ;;  %s810_s24 = sshll.u32 %s895_s18, 4  ;;  %s811_s24 = int_to_ptr.vmem [resolvable:$false] %s810_s24 }
  0x3f   : > { %s812_s25 = scalar_lea.vmem %s811_s24, 512  ;;  %p813_p3 = scmp.lt.s32.totalorder %s1022_s22, %s811_s24 }
  0x40   : > { %p808_p10 = pnand %p806_p8, %p792_p0  ;;  %p814_p7 = scmp.lt.s32.totalorder %s812_s25, %s805_s7 }
  0x42   : > { %p809_p13 = pneg %p808_p10  ;;  %p815_p9 = por %p814_p7, %p813_p3 }
  0x44   : > { %p816_p2 = pnand %p815_p9, %p809_p13 }
  0x46   : > { %819 = shalt.err (!%p816_p2)
}
  0x47   : > { %s896_s20 = smov 128   ;;  %s897_s26 = smov 8  }
  0x48   : > { %698 = dma.hbm_to_vmem [thread:$0]  (!%p1018_p11), %s1016_s27, 256, %s1022_s22, %s1024_s28, %s896_s20, %s896_s20, %s897_s26  }
  0x49   : > { %p1137_p0 = scmp.ne.s32.totalorder %s1132_s17, 0 }
  0x4a   : > { %s1055_s19 = sand.u32 (!%p1137_p0), 1, %s882_s10   ;;  %p1138_p5 = scmp.ne.s32.totalorder (!%p1137_p0), %s1130_s15, 0 }
  0x4b   : > { %146 = sbr.rel (%p1137_p0) target bundleno = 403 (0x193), region = 28  ;;  %s604_s29 = sshll.u32 (!%p1137_p0), %s1055_s19, 4 }
  0x4c   : > { %s149_s30 = scalar_lea.sflag (!%p1137_p0), [#allocation3], %s1055_s19  ;;  %s1059_s3 = scalar_lea.vmem (!%p1137_p0), [#allocation2], %s604_s29 }
  0x52   : > { %865 = dma.done.wait (%p1138_p5), %s149_s30, 256  }
  0x53   : > { %867 = vsyncadd (%p1138_p5), %s149_s30, 4294967040  ;;  %p1139_p11 = scmp.eq.s32.totalorder %s937_s13, 0 }
  0x55   : > { %869 = dma.done.wait (%p1139_p11), [#allocation6], 8192   ;;  %p1140_p1 = pmov %p1139_p11 }
  0x56   : > { %v898_v0 = vmov 0.0   ;;  %v183_v1 = vld [vmem:[#allocation5 + $0x18] sm:$0xff]  ;;  %v182_v3 = vld [vmem:[#allocation5 + $0x10] sm:$0xff]  ;;  %v181_v22 = vld [vmem:[#allocation5 + $0x8] sm:$0xff]  ;;  %s606_s15 = sshll.u32 %s1055_s19, 2  ;;  %s618_s17 = sshll.u32 %s937_s13, 6 }
  0x57   : > { %871 = vsyncadd (%p1140_p1), [#allocation6], 4294959104  ;;  %385 = vmatprep.mubr.f32.mxu1 %v898_v0  ;;  %308 = vmatprep.mubr.f32.mxu0 %v898_v0  ;;  %v187_v2 = vld [vmem:[#allocation5 + $0x38] sm:$0xff]  ;;  %v186_v5 = vld [vmem:[#allocation5 + $0x30] sm:$0xff]  ;;  %s176_s27 = scalar_lea.vmem [#allocation7], %s606_s15  ;;  %s1080_s4 = scalar_lea.hbm %s1126_s2, %s618_s17 }
  0x58   : > { %v651_v4 = vpack.c.bf16 %v187_v2, %v183_v1  ;;  %v191_v6 = vld [vmem:[#allocation5 + $0x58] sm:$0xff]  ;;  %v653_v8 = vpack.c.bf16 %v186_v5, %v182_v3  ;;  %v190_v10 = vld [vmem:[#allocation5 + $0x50] sm:$0xff]  ;;  %v185_v26 = vld [vmem:[#allocation5 + $0x28] sm:$0xff]  ;;  %s516_s22 = sshll.u32 %s176_s27, 4  ;;  %s502_s5 = scalar_lea.sflag [#allocation4], %s1055_s19  ;;  %s1082_s22 = int_to_ptr.vmem [resolvable:$true] %s516_s22 }
  0x59   : > { %v195_v7 = vld [vmem:[#allocation5 + $0x78] sm:$0xff]  ;;  %v194_v11 = vld [vmem:[#allocation5 + $0x70] sm:$0xff]  ;;  %v619_v28 = vpack.c.bf16 %v185_v26, %v181_v22  ;;  %v180_v29 = vld [vmem:[#allocation5] sm:$0xff]  ;;  %s820_s6 = scalar_lea.vmem %s1082_s22, 64  ;;  %s900_s13 = smov [#allocation7]  }
  0x5a   : > { %v655_v9 = vpack.c.bf16 %v195_v7, %v191_v6  ;;  %v199_v12 = vld [vmem:[#allocation5 + $0x98] sm:$0xff]  ;;  %652 = vmatprep.subr.bf16.mxu1 %v651_v4  ;;  %v657_v14 = vpack.c.bf16 %v194_v11, %v190_v10  ;;  %v198_v16 = vld [vmem:[#allocation5 + $0x90] sm:$0xff]  ;;  %v184_v30 = vld [vmem:[#allocation5 + $0x20] sm:$0xff]  ;;  %p821_p4 = scmp.ne.s32.totalorder %s1082_s22, %s820_s6  ;;  %s824_s7 = sshll.u32 %s900_s13, 4  ;;  %s825_s7 = int_to_ptr.vmem [resolvable:$false] %s824_s7 }
  0x5b   : > { %v203_v13 = vld [vmem:[#allocation5 + $0xb8] sm:$0xff]  ;;  %654 = vmatpush1.bf16.msra.mxu1 %v653_v8  ;;  %v202_v17 = vld [vmem:[#allocation5 + $0xb0] sm:$0xff]  ;;  %v621_v32 = vpack.c.bf16 %v184_v30, %v180_v29  ;;  %v189_v33 = vld [vmem:[#allocation5 + $0x48] sm:$0xff]  ;;  %620 = vmatprep.subr.bf16.mxu0 %v619_v28  ;;  %s826_s18 = scalar_lea.vmem %s825_s7, 128  ;;  %p827_p10 = scmp.lt.s32.totalorder %s1082_s22, %s825_s7 }
  0x5c   : > { %656 = vmatprep.subr.bf16.mxu1 %v655_v9  ;;  %v659_v15 = vpack.c.bf16 %v203_v13, %v199_v12  ;;  %v207_v18 = vld [vmem:[#allocation5 + $0xd8] sm:$0xff]  ;;  %v661_v20 = vpack.c.bf16 %v202_v17, %v198_v16  ;;  %v206_v21 = vld [vmem:[#allocation5 + $0xd0] sm:$0xff]  ;;  %v193_v34 = vld [vmem:[#allocation5 + $0x68] sm:$0xff]  ;;  %p822_p6 = pnand %p821_p4, %p1007_p12  ;;  %p828_p13 = scmp.lt.s32.totalorder %s826_s18, %s820_s6 }
  0x5d   : > { %v211_v19 = vld [vmem:[#allocation5 + $0xf8] sm:$0xff]  ;;  %v210_v24 = vld [vmem:[#allocation5 + $0xf0] sm:$0xff]  ;;  %v623_v38 = vpack.c.bf16 %v193_v34, %v189_v33  ;;  %v188_v39 = vld [vmem:[#allocation5 + $0x40] sm:$0xff]  ;;  %622 = vmatpush1.bf16.msra.mxu0 %v621_v32 }
  0x5e   : > { %v663_v23 = vpack.c.bf16 %v211_v19, %v207_v18  ;;  %v215_v25 = vld [vmem:[#allocation5 + $0x118] sm:$0xff]  ;;  %v214_v31 = vld [vmem:[#allocation5 + $0x110] sm:$0xff]  ;;  %v665_v35 = vpack.c.bf16 %v210_v24, %v206_v21  ;;  %v192_v42 = vld [vmem:[#allocation5 + $0x60] sm:$0xff]  ;;  %p823_p8 = pneg %p822_p6  ;;  %p829_p3 = por %p828_p13, %p827_p10 }
  0x5f   : > { %658 = vmatpush1.bf16.msra.mxu1 %v657_v14  ;;  %v219_v27 = vld [vmem:[#allocation5 + $0x138] sm:$0xff]  ;;  %v218_v36 = vld [vmem:[#allocation5 + $0x130] sm:$0xff]  ;;  %v197_v43 = vld [vmem:[#allocation5 + $0x88] sm:$0xff]  ;;  %624 = vmatprep.subr.bf16.mxu0 %v623_v38  ;;  %v625_v44 = vpack.c.bf16 %v192_v42, %v188_v39 }
  0x60   : > { %660 = vmatprep.subr.bf16.mxu1 %v659_v15  ;;  %v223_v37 = vld [vmem:[#allocation5 + $0x158] sm:$0xff]  ;;  %v667_v40 = vpack.c.bf16 %v219_v27, %v215_v25  ;;  %v201_v45 = vld [vmem:[#allocation5 + $0xa8] sm:$0xff]  ;;  %v196_v46 = vld [vmem:[#allocation5 + $0x80] sm:$0xff]  ;;  %v669_v51 = vpack.c.bf16 %v218_v36, %v214_v31  ;;  %p830_p7 = pnand %p829_p3, %p823_p8 }
  0x61   : > { %v227_v41 = vld [vmem:[#allocation5 + $0x178] sm:$0xff]  ;;  %v200_v47 = vld [vmem:[#allocation5 + $0xa0] sm:$0xff]  ;;  %v627_v48 = vpack.c.bf16 %v201_v45, %v197_v43  ;;  %v205_v49 = vld [vmem:[#allocation5 + $0xc8] sm:$0xff]  ;;  %626 = vmatpush1.bf16.msra.mxu0 %v625_v44 }
  0x62   : > { %v209_v50 = vld [vmem:[#allocation5 + $0xe8] sm:$0xff]  ;;  %v671_v52 = vpack.c.bf16 %v227_v41, %v223_v37  ;;  %v222_v53 = vld [vmem:[#allocation5 + $0x150] sm:$0xff]  ;;  %v231_v55 = vld [vmem:[#allocation5 + $0x198] sm:$0xff]  ;;  %v629_v56 = vpack.c.bf16 %v200_v47, %v196_v46 }
  0x63   : > { %662 = vmatpush1.bf16.msra.mxu1 %v661_v20  ;;  %v226_v54 = vld [vmem:[#allocation5 + $0x170] sm:$0xff]  ;;  %v235_v57 = vld [vmem:[#allocation5 + $0x1b8] sm:$0xff]  ;;  %628 = vmatprep.subr.bf16.mxu0 %v627_v48  ;;  %v631_v58 = vpack.c.bf16 %v209_v50, %v205_v49  ;;  %v204_v59 = vld [vmem:[#allocation5 + $0xc0] sm:$0xff] }
  0x64   : > { %664 = vmatprep.subr.bf16.mxu1 %v663_v23  ;;  %v208_v60 = vld [vmem:[#allocation5 + $0xe0] sm:$0xff]  ;;  %v213_v61 = vld [vmem:[#allocation5 + $0x108] sm:$0xff]  ;;  %v673_v63 = vpack.c.bf16 %v226_v54, %v222_v53  ;;  %v675_v1 = vpack.c.bf16 %v235_v57, %v231_v55  ;;  %v230_v2 = vld [vmem:[#allocation5 + $0x190] sm:$0xff] }
  0x65   : > { %v217_v62 = vld [vmem:[#allocation5 + $0x128] sm:$0xff]  ;;  %v234_v3 = vld [vmem:[#allocation5 + $0x1b0] sm:$0xff]  ;;  %v239_v4 = vld [vmem:[#allocation5 + $0x1d8] sm:$0xff]  ;;  %630 = vmatpush1.bf16.msra.mxu0 %v629_v56  ;;  %v633_v5 = vpack.c.bf16 %v208_v60, %v204_v59 }
  0x66   : > { %v243_v6 = vld [vmem:[#allocation5 + $0x1f8] sm:$0xff]  ;;  %632 = vmatprep.subr.bf16.mxu0 %v631_v58  ;;  %v635_v7 = vpack.c.bf16 %v217_v62, %v213_v61  ;;  %v212_v8 = vld [vmem:[#allocation5 + $0x100] sm:$0xff]  ;;  %v221_v10 = vld [vmem:[#allocation5 + $0x148] sm:$0xff]  ;;  %v677_v12 = vpack.c.bf16 %v234_v3, %v230_v2 }
  0x67   : > { %666 = vmatpush1.bf16.msra.mxu1 %v665_v35  ;;  %v216_v9 = vld [vmem:[#allocation5 + $0x120] sm:$0xff]  ;;  %v225_v11 = vld [vmem:[#allocation5 + $0x168] sm:$0xff]  ;;  %v679_v13 = vpack.c.bf16 %v243_v6, %v239_v4  ;;  %v238_v14 = vld [vmem:[#allocation5 + $0x1d0] sm:$0xff] }
  0x68   : > { %668 = vmatprep.subr.bf16.mxu1 %v667_v40  ;;  %v242_v15 = vld [vmem:[#allocation5 + $0x1f0] sm:$0xff]  ;;  %v637_v16 = vpack.c.bf16 %v216_v9, %v212_v8  ;;  %v639_v17 = vpack.c.bf16 %v225_v11, %v221_v10  ;;  %v220_v18 = vld [vmem:[#allocation5 + $0x140] sm:$0xff]  ;;  %v229_v20 = vld [vmem:[#allocation5 + $0x188] sm:$0xff] }
  0x69   : > { %634 = vmatpush1.bf16.msra.mxu0 %v633_v5  ;;  %v224_v19 = vld [vmem:[#allocation5 + $0x160] sm:$0xff]  ;;  %v233_v21 = vld [vmem:[#allocation5 + $0x1a8] sm:$0xff]  ;;  %v681_v22 = vpack.c.bf16 %v242_v15, %v238_v14  ;;  %v446_v15 = vlaneseq }
  0x6a   : > { %636 = vmatprep.subr.bf16.mxu0 %v635_v7  ;;  %v641_v23 = vpack.c.bf16 %v224_v19, %v220_v18  ;;  %v643_v24 = vpack.c.bf16 %v233_v21, %v229_v20  ;;  %v228_v25 = vld [vmem:[#allocation5 + $0x180] sm:$0xff]  ;;  %v237_v27 = vld [vmem:[#allocation5 + $0x1c8] sm:$0xff] }
  0x6b   : > { %670 = vmatpush1.bf16.msra.mxu1 %v669_v51  ;;  %v232_v26 = vld [vmem:[#allocation5 + $0x1a0] sm:$0xff]  ;;  %v241_v28 = vld [vmem:[#allocation5 + $0x1e8] sm:$0xff]  ;;  %vm460_vm0 = vcmp.lt.s32.totalorder %v446_v15, 256 }
  0x6c   : > { %672 = vmatprep.subr.bf16.mxu1 %v671_v52  ;;  %v178_v29 = vld [vmem:[%s1059_s3] sm:$0xff]  ;;  %v645_v30 = vpack.c.bf16 %v232_v26, %v228_v25  ;;  %v647_v31 = vpack.c.bf16 %v241_v28, %v237_v27  ;;  %v179_v34 = vld [vmem:[%s1059_s3 + $0x8] sm:$0xff]  ;;  %v447_v25 = vshrl.u32 %v446_v15, 7 }
  0x6d   : > { %638 = vmatpush1.bf16.msra.mxu0 %v637_v16  ;;  %v236_v32 = vld [vmem:[#allocation5 + $0x1c0] sm:$0xff] }
  0x6e   : > { %640 = vmatprep.subr.bf16.mxu0 %v639_v17  ;;  %v240_v33 = vld [vmem:[#allocation5 + $0x1e0] sm:$0xff] }
  0x6f   : > { %674 = vmatpush1.bf16.msra.mxu1 %v673_v63  ;;  %v649_v35 = vpack.c.bf16 %v240_v33, %v236_v32 }
  0x70   : > { %676 = vmatprep.subr.bf16.mxu1 %v675_v1 }
  0x71   : > { %642 = vmatpush1.bf16.msra.mxu0 %v641_v23 }
  0x72   : > { %644 = vmatprep.subr.bf16.mxu0 %v643_v24 }
  0x73   : > { %678 = vmatpush1.bf16.msra.mxu1 %v677_v12 }
  0x74   : > { %680 = vmatprep.subr.bf16.mxu1 %v679_v13  ;;  %v899_v13 = vmov 1966171168  }
  0x75   : > { %646 = vmatpush1.bf16.msra.mxu0 %v645_v30  ;;  %v444_v14 = vunpack.c.l.s4 %v899_v13 }
  0x76   : > { %648 = vmatprep.subr.bf16.mxu0 %v647_v31 }
  0x77   : > { %682 = vmatpush1.bf16.msra.mxu1 %v681_v22  ;;  %v445_v24 = vunpack.c.0.s8 %v444_v14 }
  0x79   : > { %650 = vmatpush1.bf16.msra.mxu0 %v649_v35 }
  0x7a   : > { %386 = vmatmul.mubr.f32.vlgmr.msra.gmra.mrb[0].mxu1 %v178_v29 }
  0x7b   : > { %391 = vmatprep.mubr.f32.mxu1 %v898_v0 }
  0x7c   : > { %309 = vmatmul.mubr.f32.vlgmr.msra.gmra.mrb[0].mxu0 %v178_v29 }
  0x7d   : > { %314 = vmatprep.mubr.f32.mxu0 %v898_v0 }
  0x7e   : > { %392 = vmatmul.mubr.f32.gmra.mrb[2].mxu1 %v179_v34 }
  0x80   : > { %315 = vmatmul.mubr.f32.gmra.mrb[2].mxu0 %v179_v34  ;;  %v448_v34 = vsub.s32 %v445_v24, %v447_v25 }
 0x14d   : > { %v387_v36 = vpop.f32.mrb[0].mxu1 }
 0x14e   : > { %v607_v37 = vmul.f32 -1.442695, %v387_v36  ;;  %v389_v38 = vpop.f32.mrb[1].mxu1 }
 0x14f   : > { %v608_v39 = vmul.f32 -1.442695, %v389_v38  ;;  %v310_v44 = vpop.f32.mrb[0].mxu0 }
 0x150   : > { %746 = vpow2.f32 %v607_v37  ;;  %v312_v45 = vpop.f32.mrb[1].mxu0 }
 0x151   : > { %748 = vpow2.f32 %v608_v39  ;;  %v393_v40 = vpop.f32.mrb[2].mxu1 }
 0x152   : > { %v609_v41 = vmul.f32 -1.442695, %v393_v40  ;;  %v395_v42 = vpop.f32.mrb[3].mxu1 }
 0x153   : > { %v610_v43 = vmul.f32 -1.442695, %v395_v42  ;;  %v316_v47 = vpop.f32.mrb[2].mxu0 }
 0x154   : > { %750 = vpow2.f32 %v609_v41  ;;  %v318_v0 = vpop.f32.mrb[3].mxu0 }
 0x155   : > { %752 = vpow2.f32 %v610_v43 }
 0x15a   : > { %v747_v46 = vpop.eup %746 }
 0x15b   : > { %v749_v48 = vpop.eup %748  ;;  %v410_v49 = vadd.f32 1.0, %v747_v46 }
 0x15c   : > { %v411_v50 = vadd.f32 1.0, %v749_v48 }
 0x15d   : > { %754 = vrcp.f32 %v410_v49 }
 0x15e   : > { %v751_v51 = vpop.eup %750  ;;  %756 = vrcp.f32 %v411_v50 }
 0x15f   : > { %v753_v52 = vpop.eup %752  ;;  %v412_v53 = vadd.f32 1.0, %v751_v51 }
 0x160   : > { %v413_v54 = vadd.f32 1.0, %v753_v52 }
 0x161   : > { %758 = vrcp.f32 %v412_v53 }
 0x162   : > { %760 = vrcp.f32 %v413_v54 }
 0x167   : > { %v755_v55 = vpop.eup %754 }
 0x168   : > { %v757_v56 = vpop.eup %756  ;;  %v422_v57 = vmul.f32 %v755_v55, %v310_v44 }
 0x169   : > { %v423_v58 = vmul.f32 %v757_v56, %v312_v45 }
 0x16a   : > { %v463_v63 = vmul.f32 %v422_v57, %v422_v57 }
 0x16b   : > { %v759_v59 = vpop.eup %758  ;;  %v464_v3 = vmul.f32 %v423_v58, %v423_v58 }
 0x16c   : > { %v761_v60 = vpop.eup %760  ;;  %v424_v61 = vmul.f32 %v759_v59, %v316_v47 }
 0x16d   : > { %v425_v62 = vmul.f32 %v761_v60, %v318_v0 }
 0x16e   : > { %v426_v1 = vadd.f32 %v424_v61, %v422_v57  ;;  %v465_v2 = vmul.f32 %v424_v61, %v424_v61 }
 0x16f   : > { %v433_v4 = vadd.f32 %v425_v62, %v423_v58  ;;  %v466_v5 = vmul.f32 %v425_v62, %v425_v62 }
 0x170   : > { %v427_v6 = vrot.slane %v426_v1, 4  ;;  %v467_v7 = vadd.f32 %v465_v2, %v463_v63 }
 0x171   : > { %v434_v8 = vrot.slane %v433_v4, 4  ;;  %v474_v9 = vadd.f32 %v466_v5, %v464_v3 }
 0x172   : > { %v428_v10 = vadd.f32 %v427_v6, %v426_v1  ;;  %v468_v11 = vrot.slane %v467_v7, 4 }
 0x173   : > { %v435_v12 = vadd.f32 %v434_v8, %v433_v4  ;;  %v475_v16 = vrot.slane %v474_v9, 4 }
 0x174   : > { %v429_v17 = vrot.slane %v428_v10, 2  ;;  %v469_v18 = vadd.f32 %v468_v11, %v467_v7 }
 0x175   : > { %v436_v19 = vrot.slane %v435_v12, 2  ;;  %v476_v20 = vadd.f32 %v475_v16, %v474_v9 }
 0x176   : > { %v430_v21 = vadd.f32 %v429_v17, %v428_v10  ;;  %v470_v22 = vrot.slane %v469_v18, 2 }
 0x177   : > { %v437_v23 = vadd.f32 %v436_v19, %v435_v12  ;;  %v477_v26 = vrot.slane %v476_v20, 2 }
 0x178   : > { %v431_v27 = vrot.slane %v430_v21, 1  ;;  %v471_v28 = vadd.f32 %v470_v22, %v469_v18 }
 0x179   : > { %v438_v29 = vrot.slane %v437_v23, 1  ;;  %v478_v30 = vadd.f32 %v477_v26, %v476_v20 }
 0x17a   : > { %v432_v31 = vadd.f32 %v431_v27, %v430_v21  ;;  %v472_v32 = vrot.slane %v471_v28, 1 }
 0x17b   : > { %v439_v33 = vadd.f32 %v438_v29, %v437_v23  ;;  %v479_v35 = vrot.slane %v478_v30, 1 }
 0x17c   : > { %v473_v36 = vadd.f32 %v472_v32, %v471_v28 }
 0x17d   : > { %v442_v37 = vcombine.low %v432_v31, %v439_v33  ;;  %v480_v38 = vadd.f32 %v479_v35, %v478_v30 }
 0x17f   : > { %v449_v39 = vrot.slane %v442_v37, %v448_v34  ;;  %v483_v40 = vcombine.low %v473_v36, %v480_v38 }
 0x181   : > { %v456_v41 = vrot.slane %v449_v39, %v448_v34  ;;  %v490_v42 = vrot.slane %v483_v40, %v448_v34 }
 0x183   : > { %462 = vst.msk [vmem:[%s176_s27] ss:$2 sm:$0x3] %vm460_vm0, %v456_v41  ;;  %v497_v43 = vrot.slane %v490_v42, %v448_v34 }
 0x185   : > { %611 = vst.msk [vmem:[%s176_s27 + $0x1] ss:$2 sm:$0x3] %vm460_vm0, %v497_v43 }
 0x186   : > { %833 = shalt.err (!%p830_p7)
}
 0x187   : > { %s834_s24 = scalar_lea.hbm %s1080_s4, 64  ;;  %s838_s26 = scalar_lea.hbm %s1126_s2, 128 }
 0x188   : > { %p835_p9 = scmp.ne.s32.totalorder %s1080_s4, %s834_s24  ;;  %p839_p5 = scmp.lt.u32.totalorder %s1080_s4, %s1126_s2 }
 0x189   : > { %p840_p11 = scmp.lt.u32.totalorder %s838_s26, %s834_s24  ;;  %p842_p4 = scmp.lt.u32.totalorder %s834_s24, %s1080_s4 }
 0x18a   : > { %p836_p2 = pnand %p835_p9, %p1007_p12 }
 0x18b   : > { %p841_p1 = por %p840_p11, %p839_p5 }
 0x18c   : > { %p837_p0 = pneg %p836_p2 }
 0x18d   : > { %p843_p6 = por %p842_p4, %p841_p1 }
 0x18f   : > { %p844_p8 = pnand %p843_p6, %p837_p0 }
 0x191   : > { %847 = shalt.err (!%p844_p8)
}
 0x192   : > { %689 = dma.vmem_to_hbm [thread:$0]  (%p1007_p12), %s1082_s22, 64, %s1080_s4, %s502_s5  }
 0x193 PF: > { %s528_s30 = sand.u32 1, %s878_s9   ;;  %p1141_p10 = scmp.ne.s32.totalorder %s1131_s16, 0 }
 0x194   : > { %p1142_p13 = scmp.ge.s32.totalorder %s890_s12, 2  ;;  %s529_s3 = scalar_lea.sflag [#allocation4], %s528_s30 }
 0x196   : > { %p700_p3 = pnand %p1142_p13, %p1141_p10 }
 0x198   : > { %873 = dma.done.wait (!%p700_p3), %s529_s3, 64  }
 0x199   : > { %875 = vsyncadd (!%p700_p3), %s529_s3, 4294967232  ;;  %p16_p7 = scmp.ge.s32.totalorder %s972_s21, 4   ;;  %s1143_s9 = smov %s882_s10 }
 0x19a   : > { %s1144_s10 = smov %s886_s11  ;;  %s1145_s11 = smov %s1003_s8 }
 0x19b   : > { %s1146_s12 = smov %s972_s21  ;;  %18 = sbr.rel (!%p16_p7) target bundleno = 6 (0x6), region = 78 }
 0x1a2   :  { %534 = vsyncpa [#allocation3], 1 }
 0x1a3   :  { %536 = vsyncpa [#allocation3 + $0x1], 1 }
 0x1a4   :  { %537 = vsyncpa [#allocation6], 1 }
 0x1a5   :  { %538 = vsyncpa [#allocation4], 1 }
 0x1a6   :  { %540 = vsyncpa [#allocation4 + $0x1], 1 }

</bundles_post_ra>
